<compile_context>
chip_gen: v5e
topology: v5e:2x2
jax: 0.10.0
libtpu: 0.0.40
codegen_flags: <defaults>
</compile_context>

<pallas_src>
import functools

import jax
import jax.numpy as jnp
from jax import lax
from jax.experimental import pallas as pl
from jax.experimental.pallas import tpu as pltpu


def _round_up(a, b):
    return (a + b - 1) // b * b


def _patch_embed_norm_kernel(x_ref, w_ref, b_ref, g_ref, o_ref, *, eps):
    # x_ref: (tm, K) patch rows; w_ref: (K, E); b_ref/g_ref: (1, E) f32.
    acc = jnp.dot(x_ref[...], w_ref[...], preferred_element_type=jnp.float32)
    acc = acc + b_ref[...]                                   # (1, E) broadcasts
    ms = jnp.mean(acc * acc, axis=-1, keepdims=True)         # per-row mean of squares
    acc = (acc * lax.rsqrt(ms + eps)) * g_ref[...]           # gain already holds sqrt(E)
    o_ref[...] = acc.astype(o_ref.dtype)


def _patch_embed_kernel(x_ref, w_ref, b_ref, o_ref):
    acc = jnp.dot(x_ref[...], w_ref[...], preferred_element_type=jnp.float32)
    acc = acc + b_ref[...]
    o_ref[...] = acc.astype(o_ref.dtype)


def _pick_row_tile(m, k, e, itemsize):
    """Largest sublane-aligned row tile fitting double-buffered blocks in budget."""
    budget = 24 * 1024 * 1024                    # conservative even for v7x (64 MiB VMEM)
    # double-buffered in/out blocks + one f32 working row of the accumulator
    per_row = 2 * (k + e) * itemsize + e * 4
    tm = budget // max(per_row, 1)
    tm = max(8, min(2048, (tm // 8) * 8))        # sublane-aligned, capped
    if m <= tm:
        tm = _round_up(m, 8)                     # small problem: one aligned block
    return tm


def patch_embed_forward(x, conv_w, conv_b, norm_weight=None, eps=1e-8):
    """PatchEmbed.forward (img_dim=2).

    x:           [B, C, H, W]
    conv_w:      [E, C, ph, pw]   (PyTorch OIHW conv weight; stride == kernel)
    conv_b:      [E]
    norm_weight: [E] RMSNorm gain (None -> no norm, matching norm_layer=None)
    returns:     [B, Hp*Wp, E]
    """
    B, C, H, W = x.shape
    E, Cw, ph, pw = conv_w.shape
    assert C == Cw and H % ph == 0 and W % pw == 0
    Hp, Wp = H // ph, W // pw
    N = Hp * Wp
    M = B * N
    K = C * ph * pw

    # im2col: patch vector ordered (C, ph, pw) to match OIHW weight flattening.
    x_p = x.reshape(B, C, Hp, ph, Wp, pw)
    x_p = jnp.transpose(x_p, (0, 2, 4, 1, 3, 5)).reshape(M, K)

    w_mat = conv_w.reshape(E, K).T.astype(x.dtype)            # (K, E), resident in VMEM
    b_row = conv_b.reshape(1, E).astype(jnp.float32)          # (1, E) f32

    tm = _pick_row_tile(M, K, E, jnp.dtype(x.dtype).itemsize)
    M_pad = _round_up(M, tm)
    if M_pad != M:
        x_p = jnp.pad(x_p, ((0, M_pad - M), (0, 0)))          # fuses with the transpose

    x_spec = pl.BlockSpec((tm, K), lambda i: (i, 0))          # patch rows
    w_spec = pl.BlockSpec((K, E), lambda i: (0, 0))           # projection weight
    v_spec = pl.BlockSpec((1, E), lambda i: (0, 0))           # bias / gain rows
    out_spec = pl.BlockSpec((tm, E), lambda i: (i, 0))        # lane-dense embed_dim

    if norm_weight is not None:
        g_row = norm_weight.reshape(1, E).astype(jnp.float32) * (float(E) ** 0.5)
        kernel = functools.partial(_patch_embed_norm_kernel, eps=eps)
        in_specs = [x_spec, w_spec, v_spec, v_spec]
        args = (x_p, w_mat, b_row, g_row)
    else:
        kernel = _patch_embed_kernel
        in_specs = [x_spec, w_spec, v_spec]
        args = (x_p, w_mat, b_row)

    out2d = pl.pallas_call(
        kernel,
        out_shape=jax.ShapeDtypeStruct((M_pad, E), x.dtype),
        grid_spec=pltpu.PrefetchScalarGridSpec(
            num_scalar_prefetch=0,
            grid=(M_pad // tm,),
            in_specs=in_specs,
            out_specs=out_spec,
        ),
        compiler_params=pltpu.CompilerParams(
            dimension_semantics=("parallel",),                # shards across v7x's 2 TCs
            vmem_limit_bytes=48 << 20,
        ),
    )(*args)

    return out2d[:M].reshape(B, N, E)


def _reference(x, conv_w, conv_b, norm_weight, eps):
    """Pure-JAX reference mirroring the PyTorch module."""
    E = conv_w.shape[0]
    ph, pw = conv_w.shape[2], conv_w.shape[3]
    y = lax.conv_general_dilated(
        x, conv_w, window_strides=(ph, pw), padding="VALID",
        dimension_numbers=("NCHW", "OIHW", "NCHW"))
    y = y + conv_b.reshape(1, E, 1, 1)
    B = y.shape[0]
    y = y.reshape(B, E, -1).transpose(0, 2, 1)               # flatten(2).transpose(1, 2)
    if norm_weight is not None:
        rms = jnp.sqrt(jnp.mean(y * y, axis=-1, keepdims=True) + eps)
        y = (y / rms) * norm_weight.reshape(1, 1, E) * (float(E) ** 0.5)
    return y


if __name__ == "__main__":
    key = jax.random.PRNGKey(0)
    k1, k2, k3 = jax.random.split(key, 3)

    # Small shapes consistent with the module: img_size=16, patch_size=4,
    # in_chans=4, embed_dim=32, batch=2.
    B, C, H, W = 2, 4, 16, 16
    P, E = 4, 32

    x = jax.random.normal(k1, (B, C, H, W), dtype=jnp.float32)
    conv_w = jax.random.normal(k2, (E, C, P, P), dtype=jnp.float32) * 0.05
    conv_b = jax.random.normal(k3, (E,), dtype=jnp.float32) * 0.01
    norm_w = jnp.ones((E,), dtype=jnp.float32)   # RMSNorm gain init = ones

    # norm_layer='rms' path
    out = patch_embed_forward(x, conv_w, conv_b, norm_weight=norm_w, eps=1e-8)
    out = jax.block_until_ready(out)
    ref = _reference(x, conv_w, conv_b, norm_w, 1e-8)
    assert out.shape == (B, (H // P) * (W // P), E)
    assert jnp.allclose(out, ref, atol=1e-4, rtol=1e-4)

    # norm_layer=None path (PatchEmbed default)
    out_nn = patch_embed_forward(x, conv_w, conv_b, norm_weight=None)
    out_nn = jax.block_until_ready(out_nn)
    ref_nn = _reference(x, conv_w, conv_b, None, 1e-8)
    assert jnp.allclose(out_nn, ref_nn, atol=1e-4, rtol=1e-4)

    print("KERNEL_OK")
</pallas_src>

<mosaic_0001>
module attributes {stable_mosaic.version = 11 : i64} {
  func.func @_patch_embed_norm_kernel(%arg0: i32, %arg1: memref<32x64xf32, #tpu.memory_space<vmem>>, %arg2: memref<64x32xf32, #tpu.memory_space<vmem>>, %arg3: memref<1x32xf32, #tpu.memory_space<vmem>>, %arg4: memref<1x32xf32, #tpu.memory_space<vmem>>, %arg5: memref<32x32xf32, #tpu.memory_space<vmem>>) attributes {dimension_semantics = [#tpu.dimension_semantics<parallel>], iteration_bounds = array<i64: 1>, scalar_prefetch = 0 : i64, scratch_operands = 0 : i64, tpu.core_type = #tpu.core_type<tc>, window_params = [{transform_indices = @transform_0, window_bounds = array<i64: 32, 64>}, {pipeline_mode = #tpu.pipeline_mode<synchronous>, transform_indices = @transform_1, window_bounds = array<i64: 64, 32>}, {pipeline_mode = #tpu.pipeline_mode<synchronous>, transform_indices = @transform_2, window_bounds = array<i64: 1, 32>}, {pipeline_mode = #tpu.pipeline_mode<synchronous>, transform_indices = @transform_3, window_bounds = array<i64: 1, 32>}, {transform_indices = @transform_4, window_bounds = array<i64: 32, 32>}]} {
    %c0 = arith.constant 0 : index
    %c0_0 = arith.constant 0 : index
    %0 = vector.load %arg1[%c0, %c0_0] : memref<32x64xf32, #tpu.memory_space<vmem>>, vector<32x64xf32>
    %c0_1 = arith.constant 0 : index
    %c0_2 = arith.constant 0 : index
    %1 = vector.load %arg2[%c0_1, %c0_2] : memref<64x32xf32, #tpu.memory_space<vmem>>, vector<64x32xf32>
    %cst = arith.constant dense<0.000000e+00> : vector<32x32xf32>
    %2 = tpu.matmul %0, %1, %cst {dimension_numbers = #tpu.dot_dimension_numbers<[1], [0], [0], [1], [0, 0, 1, 1], [], []>} : vector<32x64xf32>, vector<64x32xf32>, vector<32x32xf32> -> vector<32x32xf32>
    %c0_3 = arith.constant 0 : index
    %c0_4 = arith.constant 0 : index
    %3 = vector.load %arg3[%c0_3, %c0_4] : memref<1x32xf32, #tpu.memory_space<vmem>>, vector<1x32xf32>
    %4 = vector.broadcast %3 : vector<1x32xf32> to vector<32x32xf32>
    %5 = arith.addf %2, %4 : vector<32x32xf32>
    %6 = arith.mulf %5, %5 : vector<32x32xf32>
    %cst_5 = arith.constant dense<0.000000e+00> : vector<32xf32>
    %7 = vector.multi_reduction <add>, %6, %cst_5 [1] : vector<32x32xf32> to vector<32xf32>
    %8 = vector.shape_cast %7 : vector<32xf32> to vector<32x1xf32>
    %cst_6 = arith.constant 3.200000e+01 : f32
    %9 = vector.broadcast %cst_6 : f32 to vector<32x1xf32>
    %10 = arith.divf %8, %9 : vector<32x1xf32>
    %cst_7 = arith.constant 9.99999993E-9 : f32
    %11 = vector.broadcast %cst_7 : f32 to vector<32x1xf32>
    %12 = arith.addf %10, %11 : vector<32x1xf32>
    %13 = math.rsqrt %12 : vector<32x1xf32>
    %14 = vector.broadcast %13 : vector<32x1xf32> to vector<32x32xf32>
    %15 = arith.mulf %5, %14 : vector<32x32xf32>
    %c0_8 = arith.constant 0 : index
    %c0_9 = arith.constant 0 : index
    %16 = vector.load %arg4[%c0_8, %c0_9] : memref<1x32xf32, #tpu.memory_space<vmem>>, vector<1x32xf32>
    %17 = vector.broadcast %16 : vector<1x32xf32> to vector<32x32xf32>
    %18 = arith.mulf %15, %17 : vector<32x32xf32>
    %c0_10 = arith.constant 0 : index
    %c0_11 = arith.constant 0 : index
    %19 = vector.load %arg5[%c0_10, %c0_11] : memref<32x32xf32, #tpu.memory_space<vmem>>, vector<32x32xf32>
    tpu.vector_store %arg5[%c0_10, %c0_11], %18 {strides = array<i32>} : memref<32x32xf32, #tpu.memory_space<vmem>>, vector<32x32xf32>,
    return
  }
  func.func @transform_0(%arg0: i32) -> (i32, i32) {
    %c0_i32 = arith.constant 0 : i32
    %c0_i32_0 = arith.constant 0 : i32
    return %arg0, %c0_i32 : i32, i32
  }
  func.func @transform_1(%arg0: i32) -> (i32, i32) {
    %c0_i32 = arith.constant 0 : i32
    %c0_i32_0 = arith.constant 0 : i32
    %c0_i32_1 = arith.constant 0 : i32
    return %c0_i32, %c0_i32_0 : i32, i32
  }
  func.func @transform_2(%arg0: i32) -> (i32, i32) {
    %c0_i32 = arith.constant 0 : i32
    %c0_i32_0 = arith.constant 0 : i32
    %c0_i32_1 = arith.constant 0 : i32
    return %c0_i32, %c0_i32_0 : i32, i32
  }
  func.func @transform_3(%arg0: i32) -> (i32, i32) {
    %c0_i32 = arith.constant 0 : i32
    %c0_i32_0 = arith.constant 0 : i32
    %c0_i32_1 = arith.constant 0 : i32
    return %c0_i32, %c0_i32_0 : i32, i32
  }
  func.func @transform_4(%arg0: i32) -> (i32, i32) {
    %c0_i32 = arith.constant 0 : i32
    %c0_i32_0 = arith.constant 0 : i32
    return %arg0, %c0_i32 : i32, i32
  }
}

</mosaic_0001>

<bundles_post_ra>
// kernel: tpu_custom_call.1
= control target key start
LH: loop header
LB: loop body
LE: loop exit
PB: predicated region body
PF: predicated region fallthrough
CT: control target
= control target key end

     0   :  { %s354_s0 = inlined_call_operand.vmem [shape: f32[32,64], index: 0, kind: input, shape index: {}]   ;;  %s355_s1 = inlined_call_operand.vmem [shape: f32[64,32], index: 1, kind: input, shape index: {}]   ;;  %s356_s2 = inlined_call_operand.vmem [shape: f32[1,32], index: 2, kind: input, shape index: {}]   ;;  %s357_s3 = inlined_call_operand.vmem [shape: f32[1,32], index: 3, kind: input, shape index: {}]   ;;  %s358_s4 = inlined_call_operand.hbm [shape: f32[32,32], index: 4, kind: output, shape index: {}]  }
   0x1   :  { %v29_v0 = vld [vmem:[%s355_s1 + $0x38] sm:$0xff]  ;;  %v28_v1 = vld [vmem:[%s355_s1 + $0x30] sm:$0xff]  ;;  %v27_v2 = vld [vmem:[%s355_s1 + $0x28] sm:$0xff] }
   0x2   :  { %55 = vmatpush.msra.mxu0 %v29_v0  ;;  %187 = vmatpush.msra.mxu2 %v29_v0  ;;  %v26_v3 = vld [vmem:[%s355_s1 + $0x20] sm:$0xff] }
   0x3   :  { %186 = vmatpush.msra.mxu1 %v29_v0  ;;  %188 = vmatpush.msra.mxu3 %v29_v0 }
   0x4   :  { %56 = vmatpush.msra.mxu0 %v28_v1  ;;  %190 = vmatpush.msra.mxu2 %v28_v1 }
   0x5   :  { %189 = vmatpush.msra.mxu1 %v28_v1  ;;  %191 = vmatpush.msra.mxu3 %v28_v1 }
   0x6   :  { %57 = vmatpush.msra.mxu0 %v27_v2  ;;  %193 = vmatpush.msra.mxu2 %v27_v2 }
   0x7   :  { %9 = vsyncpa [#allocation3], 0  ;;  %v25_v4 = vld [vmem:[%s355_s1 + $0x18] sm:$0xff]  ;;  %192 = vmatpush.msra.mxu1 %v27_v2  ;;  %194 = vmatpush.msra.mxu3 %v27_v2  ;;  %v24_v5 = vld [vmem:[%s355_s1 + $0x10] sm:$0xff]  ;;  %vm34_vm0 = vcmask 523264   ;;  %vm80_vm1 = vcmask 261120  }
   0x8   :  { %58 = vmatpush.msra.mxu0 %v26_v3  ;;  %196 = vmatpush.msra.mxu2 %v26_v3  ;;  %v23_v6 = vld [vmem:[%s355_s1 + $0x8] sm:$0xff]  ;;  %v22_v7 = vld [vmem:[%s355_s1] sm:$0xff]  ;;  %v20_v9 = vld [vmem:[%s354_s0 + $0x10] sm:$0xff]  ;;  %v252_v29 = vmov 32.0   ;;  %s170_s17 = sshll.u32 %s358_s4, 4  ;;  %s254_s18 = smov 128   ;;  %s171_s17 = int_to_ptr.hbm [resolvable:$true] %s170_s17 }
   0x9   :  { %195 = vmatpush.msra.mxu1 %v26_v3  ;;  %197 = vmatpush.msra.mxu3 %v26_v3  ;;  %v18_v8 = vld [vmem:[%s354_s0] sm:$0xff]  ;;  %v19_v10 = vld [vmem:[%s354_s0 + $0x8] sm:$0xff]  ;;  %v21_v11 = vld [vmem:[%s354_s0 + $0x18] sm:$0xff]  ;;  %216 = vrcp.f32 %v252_v29  ;;  %s255_s19 = smov 8  }
   0xa   :  { %59 = vmatpush.msra.mxu0 %v25_v4  ;;  %199 = vmatpush.msra.mxu2 %v25_v4  ;;  %v214_v12 = vld [vmem:[%s356_s2] ss:$0 sm:$0xff] }
   0xb   :  { %198 = vmatpush.msra.mxu1 %v25_v4  ;;  %200 = vmatpush.msra.mxu3 %v25_v4  ;;  %v215_v59 = vld [vmem:[%s357_s3] ss:$0 sm:$0xff]  ;;  %s253_s3 = smov [#allocation2]  }
   0xc   :  { %60 = vmatpush.msra.mxu0 %v24_v5  ;;  %202 = vmatpush.msra.mxu2 %v24_v5  ;;  %s168_s14 = sshll.u32 %s253_s3, 4  ;;  %s169_s14 = int_to_ptr.vmem [resolvable:$true] %s168_s14 }
   0xd   :  { %201 = vmatpush.msra.mxu1 %v24_v5  ;;  %203 = vmatpush.msra.mxu3 %v24_v5 }
   0xe   :  { %61 = vmatpush.msra.mxu0 %v23_v6  ;;  %205 = vmatpush.msra.mxu2 %v23_v6 }
   0xf   :  { %204 = vmatpush.msra.mxu1 %v23_v6  ;;  %206 = vmatpush.msra.mxu3 %v23_v6  ;;  %v217_v30 = vpop.eup %216 }
  0x10   :  { %62 = vmatpush.msra.mxu0 %v22_v7  ;;  %208 = vmatpush.msra.mxu2 %v22_v7  ;;  %v94_v31 = vmul.f32 32.0, %v217_v30  ;;  %vm98_vm2 = vweird.f32 %v217_v30 }
  0x11   :  { %182 = vmatmul.msk.f32.vlgmr.msra.gmra.mxu0 %vm34_vm0, %v18_v8  ;;  %184 = vmatmul.msk.f32.vlgmr.msra.gmra.mxu2 %vm34_vm0, %v20_v9 }
  0x12   :  { %207 = vmatpush.msra.mxu1 %v22_v7  ;;  %209 = vmatpush.msra.mxu3 %v22_v7  ;;  %v95_v32 = vsub.f32 1.0, %v94_v31 }
  0x13   :  { %183 = vmatmul.msk.f32.vlgmr.msra.gmra.mxu1 %vm34_vm0, %v19_v10  ;;  %185 = vmatmul.msk.f32.vlgmr.msra.gmra.mxu3 %vm34_vm0, %v21_v11 }
  0x14   :  { %v96_v33 = vmul.f32 %v217_v30, %v95_v32 }
  0x16   :  { %v97_v34 = vadd.f32 %v217_v30, %v96_v33 }
  0x18   :  { %v99_v35 = vsel %vm98_vm2, %v217_v30, %v97_v34 }
  0x8e   :  { %v64_v13 = vpop.f32.mrf.mxu0 }
  0x8f   :  { %v320_v14 = vadd.f32 %v214_v12, %v64_v13 }
  0x90   :  { %v67_v15 = vpop.f32.mrf.mxu1 }
  0x91   :  { %v76_v16 = vmul.f32 %v320_v14, %v320_v14  ;;  %v324_v17 = vadd.f32 %v214_v12, %v67_v15 }
  0x93   :  { %v81_v18 = vsel %vm80_vm1, %v76_v16, 0.0  ;;  %v77_v21 = vmul.f32 %v324_v17, %v324_v17 }
  0x94   :  { %v70_v19 = vpop.f32.mrf.mxu2  ;;  %82 = vadd.xlane.f32.xlu0 %v81_v18 }
  0x95   :  { %v327_v20 = vadd.f32 %v214_v12, %v70_v19  ;;  %v84_v26 = vsel %vm80_vm1, %v77_v21, 0.0 }
  0x96   :  { %v73_v22 = vpop.f32.mrf.mxu3 }
  0x97   :  { %v78_v23 = vmul.f32 %v327_v20, %v327_v20  ;;  %v333_v24 = vadd.f32 %v214_v12, %v73_v22 }
  0x99   :  { %v87_v25 = vsel %vm80_vm1, %v78_v23, 0.0  ;;  %v79_v27 = vmul.f32 %v333_v24, %v333_v24 }
  0x9a   :  { %88 = vadd.xlane.f32.xlu1 %v87_v25 }
  0x9b   :  { %v90_v28 = vsel %vm80_vm1, %v79_v27, 0.0 }
  0x9c   :  { %85 = vadd.xlane.f32.xlu0 %v84_v26 }
  0xa2   :  { %91 = vadd.xlane.f32.xlu1 %v90_v28 }
 0x107   :  { %v83_v36 = vpop.xlane.xlu0 %82 }
 0x108   :  { %v100_v37 = vmul.f32 %v99_v35, %v83_v36 }
 0x10a   :  { %v104_v38 = vadd.f32 1e-08, %v100_v37 }
 0x10c   :  { %218 = vrsqrt.f32 %v104_v38  ;;  %vm114_vm3 = vweird.f32 %v104_v38 }
 0x10d   :  { %v89_v39 = vpop.xlane.xlu1 %88 }
 0x10e   :  { %v102_v40 = vmul.f32 %v99_v35, %v89_v39 }
 0x10f   :  { %v86_v41 = vpop.xlane.xlu0 %85 }
 0x110   :  { %v106_v42 = vadd.f32 1e-08, %v102_v40  ;;  %v101_v43 = vmul.f32 %v99_v35, %v86_v41 }
 0x112   :  { %v219_v44 = vpop.eup %218  ;;  %220 = vrsqrt.f32 %v106_v42  ;;  %v105_v45 = vadd.f32 1e-08, %v101_v43  ;;  %vm134_vm7 = vweird.f32 %v106_v42 }
 0x113   :  { %v109_v46 = vmul.f32 %v219_v44, %v104_v38  ;;  %vm115_vm4 = vweird.f32 %v219_v44 }
 0x114   :  { %222 = vrsqrt.f32 %v105_v45  ;;  %vm116_vm5 = vmor %vm114_vm3, %vm115_vm4  ;;  %vm124_vm8 = vweird.f32 %v105_v45 }
 0x115   :  { %v110_v47 = vmul.f32 %v219_v44, %v109_v46  ;;  %v92_v48 = vpop.xlane.xlu1 %91 }
 0x116   :  { %v103_v49 = vmul.f32 %v99_v35, %v92_v48 }
 0x117   :  { %v111_v50 = vmul.f32 0.5, %v110_v47 }
 0x118   :  { %v221_v51 = vpop.eup %220  ;;  %v107_v52 = vadd.f32 1e-08, %v103_v49 }
 0x119   :  { %v112_v53 = vsub.f32 1.5, %v111_v50  ;;  %v129_v54 = vmul.f32 %v221_v51, %v106_v42  ;;  %vm135_vm6 = vweird.f32 %v221_v51 }
 0x11a   :  { %v223_v55 = vpop.eup %222  ;;  %224 = vrsqrt.f32 %v107_v52  ;;  %vm136_vm10 = vmor %vm134_vm7, %vm135_vm6  ;;  %vm144_vm13 = vweird.f32 %v107_v52 }
 0x11b   :  { %v113_v56 = vmul.f32 %v219_v44, %v112_v53  ;;  %v130_v57 = vmul.f32 %v221_v51, %v129_v54  ;;  %v119_v58 = vmul.f32 %v223_v55, %v105_v45  ;;  %vm125_vm9 = vweird.f32 %v223_v55 }
 0x11c   :  { %vm126_vm11 = vmor %vm124_vm8, %vm125_vm9 }
 0x11d   :  { %v117_v60 = vsel %vm116_vm5, %v219_v44, %v113_v56  ;;  %v131_v61 = vmul.f32 0.5, %v130_v57  ;;  %v120_v62 = vmul.f32 %v223_v55, %v119_v58 }
 0x11e   :  { %v148_v63 = vmul.f32 %v117_v60, %v320_v14 }
 0x11f   :  { %v132_v0 = vsub.f32 1.5, %v131_v61  ;;  %v121_v1 = vmul.f32 0.5, %v120_v62 }
 0x120   :  { %v225_v2 = vpop.eup %224  ;;  %v156_v3 = vmul.f32 %v215_v59, %v148_v63 }
 0x121   :  { %v133_v4 = vmul.f32 %v221_v51, %v132_v0  ;;  %v122_v5 = vsub.f32 1.5, %v121_v1  ;;  %v139_v6 = vmul.f32 %v225_v2, %v107_v52  ;;  %vm145_vm12 = vweird.f32 %v225_v2 }
 0x122   :  { %160 = vst.msk [vmem:[#allocation2] sm:$0xff] %vm80_vm1, %v156_v3  ;;  %vm146_vm14 = vmor %vm144_vm13, %vm145_vm12 }
 0x123   :  { %v137_v7 = vsel %vm136_vm10, %v221_v51, %v133_v4  ;;  %v123_v8 = vmul.f32 %v223_v55, %v122_v5  ;;  %v140_v9 = vmul.f32 %v225_v2, %v139_v6 }
 0x124   :  { %v150_v10 = vmul.f32 %v137_v7, %v327_v20 }
 0x125   :  { %v127_v11 = vsel %vm126_vm11, %v223_v55, %v123_v8  ;;  %v141_v12 = vmul.f32 0.5, %v140_v9 }
 0x126   :  { %v158_v13 = vmul.f32 %v215_v59, %v150_v10  ;;  %v149_v14 = vmul.f32 %v127_v11, %v324_v17 }
 0x127   :  { %v142_v15 = vsub.f32 1.5, %v141_v12 }
 0x128   :  { %162 = vst.msk [vmem:[#allocation2 + $0x10] sm:$0xff] %vm80_vm1, %v158_v13  ;;  %v157_v16 = vmul.f32 %v215_v59, %v149_v14 }
 0x129   :  { %v143_v18 = vmul.f32 %v225_v2, %v142_v15 }
 0x12a   :  { %161 = vst.msk [vmem:[#allocation2 + $0x8] sm:$0xff] %vm80_vm1, %v157_v16 }
 0x12b   :  { %v147_v19 = vsel %vm146_vm14, %v225_v2, %v143_v18 }
 0x12c   :  { %v151_v20 = vmul.f32 %v147_v19, %v333_v24 }
 0x12e   :  { %v159_v17 = vmul.f32 %v215_v59, %v151_v20 }
 0x130   :  { %163 = vst.msk [vmem:[#allocation2 + $0x18] sm:$0xff] %vm80_vm1, %v159_v17 }
 0x131   :  { %176 = dma.vmem_to_hbm [thread:$0]  %s169_s14, 512, %s171_s17, [#allocation3], %s254_s18, %s254_s18, %s255_s19  }
 0x132   :  { %250 = dma.done.wait [#allocation3], 512  }
 0x133   :  { %251 = vsyncadd [#allocation3], 4294966784 }
 0x134   :  { %181 = vsyncpa [#allocation3], 1 }

</bundles_post_ra>
